<compile_context>
chip_gen: v7x
topology: tpu7x:2x2x1
jax: 0.10.0
libtpu: 0.0.40
codegen_flags: <defaults>
</compile_context>

<pallas_src>
import math
import functools

import jax
import jax.numpy as jnp
import numpy as np
from jax import lax
from jax.experimental import pallas as pl
from jax.experimental.pallas import tpu as pltpu


# ----------------------------- Pallas kernel ------------------------------- #

def transformer_block_kernel(
    x_ref,                      # (1, N, C)
    ln1_g_ref, ln1_b_ref,       # (1, C)
    wq_ref, bq_ref,             # (H, C, D), (H, 1, D)   (scale pre-folded)
    wk_ref, bk_ref,             # (H, C, D), (H, 1, D)
    wv_ref, bv_ref,             # (H, C, D), (H, 1, D)
    wo_ref, bo_ref,             # (H, D, C), (1, C)
    ln2_g_ref, ln2_b_ref,       # (1, C)
    w1_ref, b1_ref,             # (C, 4C), (1, 4C)
    w2_ref, b2_ref,             # (4C, C), (1, C)
    o_ref,                      # (1, N, C)
    *, num_heads: int, matmul_dtype,
):
    f32 = jnp.float32
    x = x_ref[0].astype(f32)            # (N, C)
    N, C = x.shape
    H = num_heads
    eps = 1e-5

    def layernorm(v, g_ref, b_ref):
        mu = jnp.mean(v, axis=-1, keepdims=True)
        var = jnp.mean((v - mu) ** 2, axis=-1, keepdims=True)
        return (v - mu) * lax.rsqrt(var + eps) * g_ref[0] + b_ref[0]

    def mm(spec, a, b):
        # Batched / plain matmul on the MXU with f32 accumulation. Operands may
        # optionally be down-cast (bf16) via matmul_dtype; accumulation stays f32.
        return jnp.einsum(spec, a.astype(matmul_dtype), b.astype(matmul_dtype),
                          preferred_element_type=f32)

    # ---- 1) LayerNorm + multi-head self-attention (non-causal, no padding mask)
    xn = layernorm(x, ln1_g_ref, ln1_b_ref)               # (N, C)
    xb = jnp.broadcast_to(xn[None], (H, N, C))            # (H, N, C) head batch

    q = mm('hnc,hcd->hnd', xb, wq_ref[...]) + bq_ref[...]  # (H, N, D) (pre-scaled)
    k = mm('hnc,hcd->hnd', xb, wk_ref[...]) + bk_ref[...]  # (H, N, D)
    v = mm('hnc,hcd->hnd', xb, wv_ref[...]) + bv_ref[...]  # (H, N, D)

    s = mm('hnd,hmd->hnm', q, k)                           # (H, N, N)
    s = s - jnp.max(s, axis=-1, keepdims=True)
    p = jnp.exp(s)
    # EUP approximate reciprocal (frees VALU slots) for the softmax denominator.
    p = p * pl.reciprocal(jnp.sum(p, axis=-1, keepdims=True), approx=True)
    o = mm('hnm,hmd->hnd', p, v)                           # (H, N, D)

    # Per-head output projection, reduced over heads -> (N, C); no concat needed.
    attn = jnp.sum(mm('hnd,hdc->hnc', o, wo_ref[...]), axis=0) + bo_ref[0]
    x1 = x + attn                                          # residual (dropout = id)

    # ---- 2) LayerNorm + FFN (Linear -> exact GELU -> Linear) ----
    xn2 = layernorm(x1, ln2_g_ref, ln2_b_ref)
    h1 = jnp.dot(xn2.astype(matmul_dtype), w1_ref[...].astype(matmul_dtype),
                 preferred_element_type=f32) + b1_ref[0]
    h1 = 0.5 * h1 * (1.0 + lax.erf(h1 * (1.0 / math.sqrt(2.0))))   # exact GELU
    h2 = jnp.dot(h1.astype(matmul_dtype), w2_ref[...].astype(matmul_dtype),
                 preferred_element_type=f32) + b2_ref[0]

    o_ref[0] = (x1 + h2).astype(o_ref.dtype)               # residual (dropout = id)


# ------------------------- Parameter preparation ---------------------------- #

def prepare_params(params, num_heads):
    """One-time transform of canonical (PyTorch-layout, pre-transposed) params
    into the kernel layout: per-head Q/K/V and out-proj weights with the
    1/sqrt(D) attention scale folded into the Q projection."""
    C = params["wo"].shape[0]
    assert C % num_heads == 0, "hidden_size must be divisible by num_heads"
    D = C // num_heads
    scale = 1.0 / math.sqrt(D)

    wqkv, bqkv = params["wqkv"], params["bqkv"]

    def split_w(w):                       # (C, C) -> (H, C, D)
        return w.reshape(C, num_heads, D).transpose(1, 0, 2)

    def split_b(b):                       # (1, C) -> (H, 1, D)
        return b.reshape(num_heads, 1, D)

    kp = dict(params)
    kp["wq"] = split_w(wqkv[:, 0 * C:1 * C]) * scale
    kp["bq"] = split_b(bqkv[:, 0 * C:1 * C]) * scale
    kp["wk"] = split_w(wqkv[:, 1 * C:2 * C])
    kp["bk"] = split_b(bqkv[:, 1 * C:2 * C])
    kp["wv"] = split_w(wqkv[:, 2 * C:3 * C])
    kp["bv"] = split_b(bqkv[:, 2 * C:3 * C])
    kp["wo_h"] = params["wo"].reshape(num_heads, D, C)      # (H, D, C)
    return kp


# ------------------------------- Wrapper ------------------------------------ #

def transformer_block(x, kparams, num_heads, matmul_dtype=jnp.float32):
    B, N, C = x.shape
    assert C % num_heads == 0, "hidden_size must be divisible by num_heads"
    D = C // num_heads
    H4 = 4 * C
    p = kparams

    def full(shape):
        return pl.BlockSpec(shape, lambda b, n=len(shape): (0,) * n)

    in_specs = [
        pl.BlockSpec((1, N, C), lambda b: (b, 0, 0)),        # x
        full((1, C)), full((1, C)),                          # ln1 gamma/beta
        full((num_heads, C, D)), full((num_heads, 1, D)),    # wq, bq (scaled)
        full((num_heads, C, D)), full((num_heads, 1, D)),    # wk, bk
        full((num_heads, C, D)), full((num_heads, 1, D)),    # wv, bv
        full((num_heads, D, C)), full((1, C)),               # wo (per-head), bo
        full((1, C)), full((1, C)),                          # ln2 gamma/beta
        full((C, H4)), full((1, H4)),                        # ffn lin1
        full((H4, C)), full((1, C)),                         # ffn lin2
    ]

    return pl.pallas_call(
        functools.partial(transformer_block_kernel, num_heads=num_heads,
                          matmul_dtype=matmul_dtype),
        out_shape=jax.ShapeDtypeStruct((B, N, C), x.dtype),
        grid=(B,),
        in_specs=in_specs,
        out_specs=pl.BlockSpec((1, N, C), lambda b: (b, 0, 0)),
        compiler_params=pltpu.CompilerParams(
            dimension_semantics=("parallel",)),   # B batches shard across v7x TCs
    )(
        x,
        p["ln1_g"], p["ln1_b"],
        p["wq"], p["bq"], p["wk"], p["bk"], p["wv"], p["bv"],
        p["wo_h"], p["bo"],
        p["ln2_g"], p["ln2_b"],
        p["w1"], p["b1"],
        p["w2"], p["b2"],
    )


# -------------------------- Pure-JAX reference ------------------------------ #

def transformer_block_ref(x, params, num_heads):
    B, N, C = x.shape
    D = C // num_heads
    eps = 1e-5

    def ln(v, g, b):
        mu = v.mean(-1, keepdims=True)
        var = ((v - mu) ** 2).mean(-1, keepdims=True)
        return (v - mu) / jnp.sqrt(var + eps) * g[0] + b[0]

    xn = ln(x, params["ln1_g"], params["ln1_b"])
    qkv = xn @ params["wqkv"] + params["bqkv"][0]
    q, k, v = jnp.split(qkv, 3, axis=-1)
    q = q.reshape(B, N, num_heads, D).transpose(0, 2, 1, 3) / math.sqrt(D)
    k = k.reshape(B, N, num_heads, D).transpose(0, 2, 1, 3)
    v = v.reshape(B, N, num_heads, D).transpose(0, 2, 1, 3)
    s = jnp.einsum("bhqd,bhkd->bhqk", q, k)
    p = jax.nn.softmax(s, axis=-1)
    attn = jnp.einsum("bhqk,bhkd->bhqd", p, v).transpose(0, 2, 1, 3).reshape(B, N, C)
    attn = attn @ params["wo"] + params["bo"][0]
    x1 = x + attn

    xn2 = ln(x1, params["ln2_g"], params["ln2_b"])
    h1 = xn2 @ params["w1"] + params["b1"][0]
    h1 = 0.5 * h1 * (1.0 + lax.erf(h1 / math.sqrt(2.0)))
    h2 = h1 @ params["w2"] + params["b2"][0]
    return x1 + h2


# --------------------------------- Main ------------------------------------- #

if __name__ == "__main__":
    # Small shapes consistent with the module: hidden_size=32, num_heads=4.
    B, N, C, H = 2, 8, 32, 4
    H4 = 4 * C
    dtype = jnp.float32

    key = jax.random.PRNGKey(0)
    keys = jax.random.split(key, 12)

    # Deterministic synthetic parameters. PyTorch Linear weights are (out, in);
    # we store them pre-transposed as (in, out) so the math does x @ W.
    params = {
        "ln1_g": 1.0 + 0.1 * jax.random.normal(keys[0], (1, C), dtype),
        "ln1_b": 0.1 * jax.random.normal(keys[1], (1, C), dtype),
        "wqkv": 0.05 * jax.random.normal(keys[2], (C, 3 * C), dtype),
        "bqkv": 0.02 * jax.random.normal(keys[3], (1, 3 * C), dtype),
        "wo": 0.05 * jax.random.normal(keys[4], (C, C), dtype),
        "bo": 0.02 * jax.random.normal(keys[5], (1, C), dtype),
        "ln2_g": 1.0 + 0.1 * jax.random.normal(keys[6], (1, C), dtype),
        "ln2_b": 0.1 * jax.random.normal(keys[7], (1, C), dtype),
        "w1": 0.05 * jax.random.normal(keys[8], (C, H4), dtype),
        "b1": 0.02 * jax.random.normal(keys[9], (1, H4), dtype),
        "w2": 0.05 * jax.random.normal(keys[10], (H4, C), dtype),
        "b2": 0.02 * jax.random.normal(keys[11], (1, C), dtype),
    }

    x = jax.random.normal(jax.random.PRNGKey(42), (B, N, C), dtype)

    # One-time parameter preparation (scale folding + per-head weight layout).
    kparams = prepare_params(params, num_heads=H)

    out = transformer_block(x, kparams, num_heads=H, matmul_dtype=jnp.float32)
    out = jax.block_until_ready(out)

    ref = jax.block_until_ready(transformer_block_ref(x, params, num_heads=H))
    np.testing.assert_allclose(np.asarray(out), np.asarray(ref), rtol=1e-2, atol=1e-2)

    print("KERNEL_OK")
</pallas_src>

<mosaic_0001>
module attributes {stable_mosaic.version = 11 : i64} {
  func.func @transformer_block_kernel(%arg0: i32, %arg1: memref<1x8x32xf32, #tpu.memory_space<vmem>>, %arg2: memref<1x32xf32, #tpu.memory_space<vmem>>, %arg3: memref<1x32xf32, #tpu.memory_space<vmem>>, %arg4: memref<4x32x8xf32, #tpu.memory_space<vmem>>, %arg5: memref<4x1x8xf32, #tpu.memory_space<vmem>>, %arg6: memref<4x32x8xf32, #tpu.memory_space<vmem>>, %arg7: memref<4x1x8xf32, #tpu.memory_space<vmem>>, %arg8: memref<4x32x8xf32, #tpu.memory_space<vmem>>, %arg9: memref<4x1x8xf32, #tpu.memory_space<vmem>>, %arg10: memref<4x8x32xf32, #tpu.memory_space<vmem>>, %arg11: memref<1x32xf32, #tpu.memory_space<vmem>>, %arg12: memref<1x32xf32, #tpu.memory_space<vmem>>, %arg13: memref<1x32xf32, #tpu.memory_space<vmem>>, %arg14: memref<32x128xf32, #tpu.memory_space<vmem>>, %arg15: memref<1x128xf32, #tpu.memory_space<vmem>>, %arg16: memref<128x32xf32, #tpu.memory_space<vmem>>, %arg17: memref<1x32xf32, #tpu.memory_space<vmem>>, %arg18: memref<1x8x32xf32, #tpu.memory_space<vmem>>) attributes {dimension_semantics = [#tpu.dimension_semantics<parallel>], iteration_bounds = array<i64: 2>, scalar_prefetch = 0 : i64, scratch_operands = 0 : i64, tpu.core_type = #tpu.core_type<tc>, window_params = [{transform_indices = @transform_0, window_bounds = array<i64: 1, 8, 32>}, {pipeline_mode = #tpu.pipeline_mode<synchronous>, transform_indices = @transform_1, window_bounds = array<i64: 1, 32>}, {pipeline_mode = #tpu.pipeline_mode<synchronous>, transform_indices = @transform_2, window_bounds = array<i64: 1, 32>}, {pipeline_mode = #tpu.pipeline_mode<synchronous>, transform_indices = @transform_3, window_bounds = array<i64: 4, 32, 8>}, {pipeline_mode = #tpu.pipeline_mode<synchronous>, transform_indices = @transform_4, window_bounds = array<i64: 4, 1, 8>}, {pipeline_mode = #tpu.pipeline_mode<synchronous>, transform_indices = @transform_5, window_bounds = array<i64: 4, 32, 8>}, {pipeline_mode = #tpu.pipeline_mode<synchronous>, transform_indices = @transform_6, window_bounds = array<i64: 4, 1, 8>}, {pipeline_mode = #tpu.pipeline_mode<synchronous>, transform_indices = @transform_7, window_bounds = array<i64: 4, 32, 8>}, {pipeline_mode = #tpu.pipeline_mode<synchronous>, transform_indices = @transform_8, window_bounds = array<i64: 4, 1, 8>}, {pipeline_mode = #tpu.pipeline_mode<synchronous>, transform_indices = @transform_9, window_bounds = array<i64: 4, 8, 32>}, {pipeline_mode = #tpu.pipeline_mode<synchronous>, transform_indices = @transform_10, window_bounds = array<i64: 1, 32>}, {pipeline_mode = #tpu.pipeline_mode<synchronous>, transform_indices = @transform_11, window_bounds = array<i64: 1, 32>}, {pipeline_mode = #tpu.pipeline_mode<synchronous>, transform_indices = @transform_12, window_bounds = array<i64: 1, 32>}, {pipeline_mode = #tpu.pipeline_mode<synchronous>, transform_indices = @transform_13, window_bounds = array<i64: 32, 128>}, {pipeline_mode = #tpu.pipeline_mode<synchronous>, transform_indices = @transform_14, window_bounds = array<i64: 1, 128>}, {pipeline_mode = #tpu.pipeline_mode<synchronous>, transform_indices = @transform_15, window_bounds = array<i64: 128, 32>}, {pipeline_mode = #tpu.pipeline_mode<synchronous>, transform_indices = @transform_16, window_bounds = array<i64: 1, 32>}, {transform_indices = @transform_17, window_bounds = array<i64: 1, 8, 32>}]} {
    %c0 = arith.constant 0 : index
    %c0_0 = arith.constant 0 : index
    %c0_1 = arith.constant 0 : index
    %0 = vector.load %arg1[%c0, %c0_0, %c0_1] : memref<1x8x32xf32, #tpu.memory_space<vmem>>, vector<1x8x32xf32>
    %1 = vector.shape_cast %0 : vector<1x8x32xf32> to vector<8x32xf32>
    %cst = arith.constant dense<0.000000e+00> : vector<8xf32>
    %2 = vector.multi_reduction <add>, %1, %cst [1] : vector<8x32xf32> to vector<8xf32>
    %3 = vector.shape_cast %2 : vector<8xf32> to vector<8x1xf32>
    %cst_2 = arith.constant 3.200000e+01 : f32
    %4 = vector.broadcast %cst_2 : f32 to vector<8x1xf32>
    %5 = arith.divf %3, %4 : vector<8x1xf32>
    %6 = vector.broadcast %5 : vector<8x1xf32> to vector<8x32xf32>
    %7 = arith.subf %1, %6 : vector<8x32xf32>
    %8 = arith.mulf %7, %7 : vector<8x32xf32>
    %cst_3 = arith.constant dense<0.000000e+00> : vector<8xf32>
    %9 = vector.multi_reduction <add>, %8, %cst_3 [1] : vector<8x32xf32> to vector<8xf32>
    %10 = vector.shape_cast %9 : vector<8xf32> to vector<8x1xf32>
    %cst_4 = arith.constant 3.200000e+01 : f32
    %11 = vector.broadcast %cst_4 : f32 to vector<8x1xf32>
    %12 = arith.divf %10, %11 : vector<8x1xf32>
    %13 = vector.broadcast %5 : vector<8x1xf32> to vector<8x32xf32>
    %14 = arith.subf %1, %13 : vector<8x32xf32>
    %cst_5 = arith.constant 9.99999974E-6 : f32
    %15 = vector.broadcast %cst_5 : f32 to vector<8x1xf32>
    %16 = arith.addf %12, %15 : vector<8x1xf32>
    %17 = math.rsqrt %16 : vector<8x1xf32>
    %18 = vector.broadcast %17 : vector<8x1xf32> to vector<8x32xf32>
    %19 = arith.mulf %14, %18 : vector<8x32xf32>
    %c0_6 = arith.constant 0 : index
    %c0_7 = arith.constant 0 : index
    %20 = vector.load %arg2[%c0_6, %c0_7] : memref<1x32xf32, #tpu.memory_space<vmem>>, vector<1x32xf32>
    %21 = vector.shape_cast %20 : vector<1x32xf32> to vector<32xf32>
    %22 = vector.shape_cast %21 : vector<32xf32> to vector<1x32xf32>
    %23 = vector.broadcast %22 : vector<1x32xf32> to vector<8x32xf32>
    %24 = arith.mulf %19, %23 : vector<8x32xf32>
    %c0_8 = arith.constant 0 : index
    %c0_9 = arith.constant 0 : index
    %25 = vector.load %arg3[%c0_8, %c0_9] : memref<1x32xf32, #tpu.memory_space<vmem>>, vector<1x32xf32>
    %26 = vector.shape_cast %25 : vector<1x32xf32> to vector<32xf32>
    %27 = vector.shape_cast %26 : vector<32xf32> to vector<1x32xf32>
    %28 = vector.broadcast %27 : vector<1x32xf32> to vector<8x32xf32>
    %29 = arith.addf %24, %28 : vector<8x32xf32>
    %30 = vector.shape_cast %29 : vector<8x32xf32> to vector<1x8x32xf32>
    %31 = vector.shape_cast %30 : vector<1x8x32xf32> to vector<1x8x32xf32>
    %32 = vector.broadcast %31 : vector<1x8x32xf32> to vector<4x8x32xf32>
    %c0_10 = arith.constant 0 : index
    %c0_11 = arith.constant 0 : index
    %c0_12 = arith.constant 0 : index
    %33 = vector.load %arg4[%c0_10, %c0_11, %c0_12] : memref<4x32x8xf32, #tpu.memory_space<vmem>>, vector<4x32x8xf32>
    "tpu.trace_start"() <{level = 10 : i32, message = "hnc,hcd->hnd"}> : () -> ()
    %cst_13 = arith.constant dense<0.000000e+00> : vector<4x8x8xf32>
    %34 = tpu.matmul %32, %33, %cst_13 {dimension_numbers = #tpu.dot_dimension_numbers<[2], [1], [1], [2], [0, 0, 0, 1, 1, 2], [0], [0]>} : vector<4x8x32xf32>, vector<4x32x8xf32>, vector<4x8x8xf32> -> vector<4x8x8xf32>
    "tpu.trace_stop"() : () -> ()
    %c0_14 = arith.constant 0 : index
    %c0_15 = arith.constant 0 : index
    %c0_16 = arith.constant 0 : index
    %35 = vector.load %arg5[%c0_14, %c0_15, %c0_16] : memref<4x1x8xf32, #tpu.memory_space<vmem>>, vector<4x1x8xf32>
    %36 = vector.broadcast %35 : vector<4x1x8xf32> to vector<4x8x8xf32>
    %37 = arith.addf %34, %36 : vector<4x8x8xf32>
    %c0_17 = arith.constant 0 : index
    %c0_18 = arith.constant 0 : index
    %c0_19 = arith.constant 0 : index
    %38 = vector.load %arg6[%c0_17, %c0_18, %c0_19] : memref<4x32x8xf32, #tpu.memory_space<vmem>>, vector<4x32x8xf32>
    "tpu.trace_start"() <{level = 10 : i32, message = "hnc,hcd->hnd"}> : () -> ()
    %cst_20 = arith.constant dense<0.000000e+00> : vector<4x8x8xf32>
    %39 = tpu.matmul %32, %38, %cst_20 {dimension_numbers = #tpu.dot_dimension_numbers<[2], [1], [1], [2], [0, 0, 0, 1, 1, 2], [0], [0]>} : vector<4x8x32xf32>, vector<4x32x8xf32>, vector<4x8x8xf32> -> vector<4x8x8xf32>
    "tpu.trace_stop"() : () -> ()
    %c0_21 = arith.constant 0 : index
    %c0_22 = arith.constant 0 : index
    %c0_23 = arith.constant 0 : index
    %40 = vector.load %arg7[%c0_21, %c0_22, %c0_23] : memref<4x1x8xf32, #tpu.memory_space<vmem>>, vector<4x1x8xf32>
    %41 = vector.broadcast %40 : vector<4x1x8xf32> to vector<4x8x8xf32>
    %42 = arith.addf %39, %41 : vector<4x8x8xf32>
    %c0_24 = arith.constant 0 : index
    %c0_25 = arith.constant 0 : index
    %c0_26 = arith.constant 0 : index
    %43 = vector.load %arg8[%c0_24, %c0_25, %c0_26] : memref<4x32x8xf32, #tpu.memory_space<vmem>>, vector<4x32x8xf32>
    "tpu.trace_start"() <{level = 10 : i32, message = "hnc,hcd->hnd"}> : () -> ()
    %cst_27 = arith.constant dense<0.000000e+00> : vector<4x8x8xf32>
    %44 = tpu.matmul %32, %43, %cst_27 {dimension_numbers = #tpu.dot_dimension_numbers<[2], [1], [1], [2], [0, 0, 0, 1, 1, 2], [0], [0]>} : vector<4x8x32xf32>, vector<4x32x8xf32>, vector<4x8x8xf32> -> vector<4x8x8xf32>
    "tpu.trace_stop"() : () -> ()
    %c0_28 = arith.constant 0 : index
    %c0_29 = arith.constant 0 : index
    %c0_30 = arith.constant 0 : index
    %45 = vector.load %arg9[%c0_28, %c0_29, %c0_30] : memref<4x1x8xf32, #tpu.memory_space<vmem>>, vector<4x1x8xf32>
    %46 = vector.broadcast %45 : vector<4x1x8xf32> to vector<4x8x8xf32>
    %47 = arith.addf %44, %46 : vector<4x8x8xf32>
    "tpu.trace_start"() <{level = 10 : i32, message = "hnd,hmd->hnm"}> : () -> ()
    %cst_31 = arith.constant dense<0.000000e+00> : vector<4x8x8xf32>
    %48 = tpu.matmul %37, %42, %cst_31 {dimension_numbers = #tpu.dot_dimension_numbers<[2], [2], [1], [1], [0, 0, 0, 1, 1, 1], [0], [0]>} : vector<4x8x8xf32>, vector<4x8x8xf32>, vector<4x8x8xf32> -> vector<4x8x8xf32>
    "tpu.trace_stop"() : () -> ()
    %cst_32 = arith.constant dense<0xFF800000> : vector<4x8xf32>
    %49 = vector.multi_reduction <maximumf>, %48, %cst_32 [2] : vector<4x8x8xf32> to vector<4x8xf32>
    %50 = vector.shape_cast %49 : vector<4x8xf32> to vector<4x8x1xf32>
    %51 = vector.broadcast %50 : vector<4x8x1xf32> to vector<4x8x8xf32>
    %52 = arith.subf %48, %51 : vector<4x8x8xf32>
    %53 = math.exp %52 : vector<4x8x8xf32>
    %cst_33 = arith.constant dense<0.000000e+00> : vector<4x8xf32>
    %54 = vector.multi_reduction <add>, %53, %cst_33 [2] : vector<4x8x8xf32> to vector<4x8xf32>
    %55 = vector.shape_cast %54 : vector<4x8xf32> to vector<4x8x1xf32>
    %56 = tpu.reciprocal %55 {approx = true} : vector<4x8x1xf32> -> vector<4x8x1xf32>
    %57 = vector.broadcast %56 : vector<4x8x1xf32> to vector<4x8x8xf32>
    %58 = arith.mulf %53, %57 : vector<4x8x8xf32>
    "tpu.trace_start"() <{level = 10 : i32, message = "hnm,hmd->hnd"}> : () -> ()
    %cst_34 = arith.constant dense<0.000000e+00> : vector<4x8x8xf32>
    %59 = tpu.matmul %58, %47, %cst_34 {dimension_numbers = #tpu.dot_dimension_numbers<[2], [1], [1], [2], [0, 0, 0, 1, 1, 2], [0], [0]>} : vector<4x8x8xf32>, vector<4x8x8xf32>, vector<4x8x8xf32> -> vector<4x8x8xf32>
    "tpu.trace_stop"() : () -> ()
    %c0_35 = arith.constant 0 : index
    %c0_36 = arith.constant 0 : index
    %c0_37 = arith.constant 0 : index
    %60 = vector.load %arg10[%c0_35, %c0_36, %c0_37] : memref<4x8x32xf32, #tpu.memory_space<vmem>>, vector<4x8x32xf32>
    "tpu.trace_start"() <{level = 10 : i32, message = "hnd,hdc->hnc"}> : () -> ()
    %cst_38 = arith.constant dense<0.000000e+00> : vector<4x8x32xf32>
    %61 = tpu.matmul %59, %60, %cst_38 {dimension_numbers = #tpu.dot_dimension_numbers<[2], [1], [1], [2], [0, 0, 0, 1, 1, 2], [0], [0]>} : vector<4x8x8xf32>, vector<4x8x32xf32>, vector<4x8x32xf32> -> vector<4x8x32xf32>
    "tpu.trace_stop"() : () -> ()
    %cst_39 = arith.constant dense<0.000000e+00> : vector<8x32xf32>
    %62 = vector.multi_reduction <add>, %61, %cst_39 [0] : vector<4x8x32xf32> to vector<8x32xf32>
    %c0_40 = arith.constant 0 : index
    %c0_41 = arith.constant 0 : index
    %63 = vector.load %arg11[%c0_40, %c0_41] : memref<1x32xf32, #tpu.memory_space<vmem>>, vector<1x32xf32>
    %64 = vector.shape_cast %63 : vector<1x32xf32> to vector<32xf32>
    %65 = vector.shape_cast %64 : vector<32xf32> to vector<1x32xf32>
    %66 = vector.broadcast %65 : vector<1x32xf32> to vector<8x32xf32>
    %67 = arith.addf %62, %66 : vector<8x32xf32>
    %68 = arith.addf %1, %67 : vector<8x32xf32>
    %cst_42 = arith.constant dense<0.000000e+00> : vector<8xf32>
    %69 = vector.multi_reduction <add>, %68, %cst_42 [1] : vector<8x32xf32> to vector<8xf32>
    %70 = vector.shape_cast %69 : vector<8xf32> to vector<8x1xf32>
    %cst_43 = arith.constant 3.200000e+01 : f32
    %71 = vector.broadcast %cst_43 : f32 to vector<8x1xf32>
    %72 = arith.divf %70, %71 : vector<8x1xf32>
    %73 = vector.broadcast %72 : vector<8x1xf32> to vector<8x32xf32>
    %74 = arith.subf %68, %73 : vector<8x32xf32>
    %75 = arith.mulf %74, %74 : vector<8x32xf32>
    %cst_44 = arith.constant dense<0.000000e+00> : vector<8xf32>
    %76 = vector.multi_reduction <add>, %75, %cst_44 [1] : vector<8x32xf32> to vector<8xf32>
    %77 = vector.shape_cast %76 : vector<8xf32> to vector<8x1xf32>
    %cst_45 = arith.constant 3.200000e+01 : f32
    %78 = vector.broadcast %cst_45 : f32 to vector<8x1xf32>
    %79 = arith.divf %77, %78 : vector<8x1xf32>
    %80 = vector.broadcast %72 : vector<8x1xf32> to vector<8x32xf32>
    %81 = arith.subf %68, %80 : vector<8x32xf32>
    %cst_46 = arith.constant 9.99999974E-6 : f32
    %82 = vector.broadcast %cst_46 : f32 to vector<8x1xf32>
    %83 = arith.addf %79, %82 : vector<8x1xf32>
    %84 = math.rsqrt %83 : vector<8x1xf32>
    %85 = vector.broadcast %84 : vector<8x1xf32> to vector<8x32xf32>
    %86 = arith.mulf %81, %85 : vector<8x32xf32>
    %c0_47 = arith.constant 0 : index
    %c0_48 = arith.constant 0 : index
    %87 = vector.load %arg12[%c0_47, %c0_48] : memref<1x32xf32, #tpu.memory_space<vmem>>, vector<1x32xf32>
    %88 = vector.shape_cast %87 : vector<1x32xf32> to vector<32xf32>
    %89 = vector.shape_cast %88 : vector<32xf32> to vector<1x32xf32>
    %90 = vector.broadcast %89 : vector<1x32xf32> to vector<8x32xf32>
    %91 = arith.mulf %86, %90 : vector<8x32xf32>
    %c0_49 = arith.constant 0 : index
    %c0_50 = arith.constant 0 : index
    %92 = vector.load %arg13[%c0_49, %c0_50] : memref<1x32xf32, #tpu.memory_space<vmem>>, vector<1x32xf32>
    %93 = vector.shape_cast %92 : vector<1x32xf32> to vector<32xf32>
    %94 = vector.shape_cast %93 : vector<32xf32> to vector<1x32xf32>
    %95 = vector.broadcast %94 : vector<1x32xf32> to vector<8x32xf32>
    %96 = arith.addf %91, %95 : vector<8x32xf32>
    %c0_51 = arith.constant 0 : index
    %c0_52 = arith.constant 0 : index
    %97 = vector.load %arg14[%c0_51, %c0_52] : memref<32x128xf32, #tpu.memory_space<vmem>>, vector<32x128xf32>
    %cst_53 = arith.constant dense<0.000000e+00> : vector<8x128xf32>
    %98 = tpu.matmul %96, %97, %cst_53 {dimension_numbers = #tpu.dot_dimension_numbers<[1], [0], [0], [1], [0, 0, 1, 1], [], []>} : vector<8x32xf32>, vector<32x128xf32>, vector<8x128xf32> -> vector<8x128xf32>
    %c0_54 = arith.constant 0 : index
    %c0_55 = arith.constant 0 : index
    %99 = vector.load %arg15[%c0_54, %c0_55] : memref<1x128xf32, #tpu.memory_space<vmem>>, vector<1x128xf32>
    %100 = vector.shape_cast %99 : vector<1x128xf32> to vector<128xf32>
    %101 = vector.shape_cast %100 : vector<128xf32> to vector<1x128xf32>
    %102 = vector.broadcast %101 : vector<1x128xf32> to vector<8x128xf32>
    %103 = arith.addf %98, %102 : vector<8x128xf32>
    %cst_56 = arith.constant 5.000000e-01 : f32
    %104 = vector.broadcast %cst_56 : f32 to vector<8x128xf32>
    %105 = arith.mulf %104, %103 : vector<8x128xf32>
    %cst_57 = arith.constant 0.707106769 : f32
    %106 = vector.broadcast %cst_57 : f32 to vector<8x128xf32>
    %107 = arith.mulf %103, %106 : vector<8x128xf32>
    %108 = math.erf %107 : vector<8x128xf32>
    %cst_58 = arith.constant 1.000000e+00 : f32
    %109 = vector.broadcast %cst_58 : f32 to vector<8x128xf32>
    %110 = arith.addf %109, %108 : vector<8x128xf32>
    %111 = arith.mulf %105, %110 : vector<8x128xf32>
    %c0_59 = arith.constant 0 : index
    %c0_60 = arith.constant 0 : index
    %112 = vector.load %arg16[%c0_59, %c0_60] : memref<128x32xf32, #tpu.memory_space<vmem>>, vector<128x32xf32>
    %cst_61 = arith.constant dense<0.000000e+00> : vector<8x32xf32>
    %113 = tpu.matmul %111, %112, %cst_61 {dimension_numbers = #tpu.dot_dimension_numbers<[1], [0], [0], [1], [0, 0, 1, 1], [], []>} : vector<8x128xf32>, vector<128x32xf32>, vector<8x32xf32> -> vector<8x32xf32>
    %c0_62 = arith.constant 0 : index
    %c0_63 = arith.constant 0 : index
    %114 = vector.load %arg17[%c0_62, %c0_63] : memref<1x32xf32, #tpu.memory_space<vmem>>, vector<1x32xf32>
    %115 = vector.shape_cast %114 : vector<1x32xf32> to vector<32xf32>
    %116 = vector.shape_cast %115 : vector<32xf32> to vector<1x32xf32>
    %117 = vector.broadcast %116 : vector<1x32xf32> to vector<8x32xf32>
    %118 = arith.addf %113, %117 : vector<8x32xf32>
    %119 = arith.addf %68, %118 : vector<8x32xf32>
    %c0_64 = arith.constant 0 : index
    %c0_65 = arith.constant 0 : index
    %c0_66 = arith.constant 0 : index
    %120 = vector.load %arg18[%c0_64, %c0_65, %c0_66] : memref<1x8x32xf32, #tpu.memory_space<vmem>>, vector<1x8x32xf32>
    %121 = vector.shape_cast %120 : vector<1x8x32xf32> to vector<8x32xf32>
    %122 = vector.shape_cast %119 : vector<8x32xf32> to vector<1x8x32xf32>
    tpu.vector_store %arg18[%c0_64, %c0_65, %c0_66], %122 {strides = array<i32>} : memref<1x8x32xf32, #tpu.memory_space<vmem>>, vector<1x8x32xf32>,
    return
  }
  func.func @transform_0(%arg0: i32) -> (i32, i32, i32) {
    %c0_i32 = arith.constant 0 : i32
    %c0_i32_0 = arith.constant 0 : i32
    %c0_i32_1 = arith.constant 0 : i32
    return %arg0, %c0_i32, %c0_i32_0 : i32, i32, i32
  }
  func.func @transform_1(%arg0: i32) -> (i32, i32) {
    %c0_i32 = arith.constant 0 : i32
    %c0_i32_0 = arith.constant 0 : i32
    %c0_i32_1 = arith.constant 0 : i32
    return %c0_i32, %c0_i32_0 : i32, i32
  }
  func.func @transform_2(%arg0: i32) -> (i32, i32) {
    %c0_i32 = arith.constant 0 : i32
    %c0_i32_0 = arith.constant 0 : i32
    %c0_i32_1 = arith.constant 0 : i32
    return %c0_i32, %c0_i32_0 : i32, i32
  }
  func.func @transform_3(%arg0: i32) -> (i32, i32, i32) {
    %c0_i32 = arith.constant 0 : i32
    %c0_i32_0 = arith.constant 0 : i32
    %c0_i32_1 = arith.constant 0 : i32
    %c0_i32_2 = arith.constant 0 : i32
    return %c0_i32, %c0_i32_0, %c0_i32_1 : i32, i32, i32
  }
  func.func @transform_4(%arg0: i32) -> (i32, i32, i32) {
    %c0_i32 = arith.constant 0 : i32
    %c0_i32_0 = arith.constant 0 : i32
    %c0_i32_1 = arith.constant 0 : i32
    %c0_i32_2 = arith.constant 0 : i32
    return %c0_i32, %c0_i32_0, %c0_i32_1 : i32, i32, i32
  }
  func.func @transform_5(%arg0: i32) -> (i32, i32, i32) {
    %c0_i32 = arith.constant 0 : i32
    %c0_i32_0 = arith.constant 0 : i32
    %c0_i32_1 = arith.constant 0 : i32
    %c0_i32_2 = arith.constant 0 : i32
    return %c0_i32, %c0_i32_0, %c0_i32_1 : i32, i32, i32
  }
  func.func @transform_6(%arg0: i32) -> (i32, i32, i32) {
    %c0_i32 = arith.constant 0 : i32
    %c0_i32_0 = arith.constant 0 : i32
    %c0_i32_1 = arith.constant 0 : i32
    %c0_i32_2 = arith.constant 0 : i32
    return %c0_i32, %c0_i32_0, %c0_i32_1 : i32, i32, i32
  }
  func.func @transform_7(%arg0: i32) -> (i32, i32, i32) {
    %c0_i32 = arith.constant 0 : i32
    %c0_i32_0 = arith.constant 0 : i32
    %c0_i32_1 = arith.constant 0 : i32
    %c0_i32_2 = arith.constant 0 : i32
    return %c0_i32, %c0_i32_0, %c0_i32_1 : i32, i32, i32
  }
  func.func @transform_8(%arg0: i32) -> (i32, i32, i32) {
    %c0_i32 = arith.constant 0 : i32
    %c0_i32_0 = arith.constant 0 : i32
    %c0_i32_1 = arith.constant 0 : i32
    %c0_i32_2 = arith.constant 0 : i32
    return %c0_i32, %c0_i32_0, %c0_i32_1 : i32, i32, i32
  }
  func.func @transform_9(%arg0: i32) -> (i32, i32, i32) {
    %c0_i32 = arith.constant 0 : i32
    %c0_i32_0 = arith.constant 0 : i32
    %c0_i32_1 = arith.constant 0 : i32
    %c0_i32_2 = arith.constant 0 : i32
    return %c0_i32, %c0_i32_0, %c0_i32_1 : i32, i32, i32
  }
  func.func @transform_10(%arg0: i32) -> (i32, i32) {
    %c0_i32 = arith.constant 0 : i32
    %c0_i32_0 = arith.constant 0 : i32
    %c0_i32_1 = arith.constant 0 : i32
    return %c0_i32, %c0_i32_0 : i32, i32
  }
  func.func @transform_11(%arg0: i32) -> (i32, i32) {
    %c0_i32 = arith.constant 0 : i32
    %c0_i32_0 = arith.constant 0 : i32
    %c0_i32_1 = arith.constant 0 : i32
    return %c0_i32, %c0_i32_0 : i32, i32
  }
  func.func @transform_12(%arg0: i32) -> (i32, i32) {
    %c0_i32 = arith.constant 0 : i32
    %c0_i32_0 = arith.constant 0 : i32
    %c0_i32_1 = arith.constant 0 : i32
    return %c0_i32, %c0_i32_0 : i32, i32
  }
  func.func @transform_13(%arg0: i32) -> (i32, i32) {
    %c0_i32 = arith.constant 0 : i32
    %c0_i32_0 = arith.constant 0 : i32
    %c0_i32_1 = arith.constant 0 : i32
    return %c0_i32, %c0_i32_0 : i32, i32
  }
  func.func @transform_14(%arg0: i32) -> (i32, i32) {
    %c0_i32 = arith.constant 0 : i32
    %c0_i32_0 = arith.constant 0 : i32
    %c0_i32_1 = arith.constant 0 : i32
    return %c0_i32, %c0_i32_0 : i32, i32
  }
  func.func @transform_15(%arg0: i32) -> (i32, i32) {
    %c0_i32 = arith.constant 0 : i32
    %c0_i32_0 = arith.constant 0 : i32
    %c0_i32_1 = arith.constant 0 : i32
    return %c0_i32, %c0_i32_0 : i32, i32
  }
  func.func @transform_16(%arg0: i32) -> (i32, i32) {
    %c0_i32 = arith.constant 0 : i32
    %c0_i32_0 = arith.constant 0 : i32
    %c0_i32_1 = arith.constant 0 : i32
    return %c0_i32, %c0_i32_0 : i32, i32
  }
  func.func @transform_17(%arg0: i32) -> (i32, i32, i32) {
    %c0_i32 = arith.constant 0 : i32
    %c0_i32_0 = arith.constant 0 : i32
    %c0_i32_1 = arith.constant 0 : i32
    return %arg0, %c0_i32, %c0_i32_0 : i32, i32, i32
  }
}

</mosaic_0001>

<bundles_post_ra>
// kernel: tpu_custom_call.1
= control target key start
LH: loop header
LB: loop body
LE: loop exit
PB: predicated region body
PF: predicated region fallthrough
CT: control target
= control target key end

     0   :  { %s4060_s0 = inlined_call_operand.vmem [shape: f32[2,8,32], index: 0, kind: input, shape index: {}]   ;;  %s4061_s1 = inlined_call_operand.vmem [shape: f32[1,32], index: 1, kind: input, shape index: {}]   ;;  %s4062_s2 = inlined_call_operand.vmem [shape: f32[1,32], index: 2, kind: input, shape index: {}]   ;;  %s4063_s3 = inlined_call_operand.vmem [shape: f32[4,32,8], index: 3, kind: input, shape index: {}]   ;;  %s4064_s4 = inlined_call_operand.vmem [shape: f32[4,1,8], index: 4, kind: input, shape index: {}]   ;;  %s4065_s5 = inlined_call_operand.vmem [shape: f32[4,32,8], index: 5, kind: input, shape index: {}]   ;;  %s4066_s6 = inlined_call_operand.vmem [shape: f32[4,1,8], index: 6, kind: input, shape index: {}]   ;;  %s4067_s7 = inlined_call_operand.vmem [shape: f32[4,32,8], index: 7, kind: input, shape index: {}]   ;;  %s4068_s8 = inlined_call_operand.vmem [shape: f32[4,1,8], index: 8, kind: input, shape index: {}]   ;;  %s4069_s9 = inlined_call_operand.vmem [shape: f32[4,8,32], index: 9, kind: input, shape index: {}]   ;;  %s4070_s10 = inlined_call_operand.vmem [shape: f32[1,32], index: 10, kind: input, shape index: {}]   ;;  %s4071_s11 = inlined_call_operand.vmem [shape: f32[1,32], index: 11, kind: input, shape index: {}]   ;;  %s4072_s12 = inlined_call_operand.vmem [shape: f32[1,32], index: 12, kind: input, shape index: {}]   ;;  %s4073_s13 = inlined_call_operand.vmem [shape: f32[32,128], index: 13, kind: input, shape index: {}]   ;;  %s4074_s14 = inlined_call_operand.vmem [shape: f32[1,128], index: 14, kind: input, shape index: {}]   ;;  %s4075_s15 = inlined_call_operand.vmem [shape: f32[128,32], index: 15, kind: input, shape index: {}]   ;;  %s4076_s16 = inlined_call_operand.vmem [shape: f32[1,32], index: 16, kind: input, shape index: {}]   ;;  %s4077_s17 = inlined_call_operand.hbm [shape: f32[2,8,32], index: 17, kind: output, shape index: {}]  }
   0x1   :  { %4084 = sst [smem:[#allocation11_spill]] %s4060_s0 }
   0x2   :  { %4085 = sst [smem:[#allocation12_spill]] %s4061_s1 }
   0x3   :  { %22 = vsyncpa [#allocation3], 0 }
   0x4   :  { %24 = vsyncpa [#allocation3 + $0x1], 0  ;;  %s3516_s24 = smov 0   ;;  %s3518_s25 = smov 0  }
   0x5   :  { %s3520_s26 = smov 0   ;;  %s3522_s27 = smov 0  }
   0x6 LB: > { %4086 = sst [smem:[#allocation5_spill]] %s3408_s24  ;;  %s3537_s28 = sadd.s32 4294967295, %s3420_s27   ;;  %s3420_s27 = sphi %s3522_s27, %s4099_s27   ;;  %s3416_s26 = sphi %s3520_s26, %s4101_s26   ;;  %s3412_s25 = sphi %s3518_s25, %s4103_s25   ;;  %s3408_s24 = sphi %s3516_s24, %s4102_s24  }
   0x7   : > { %4087 = sst [smem:[#allocation6_spill]] %s3416_s26  ;;  %s2790_s29 = sadd.s32 4294967294, %s3420_s27  }
   0x8   : > { %4088 = sst [smem:[#allocation7_spill]] %s3420_s27  ;;  %s3541_s0 = sadd.s32 1, %s3420_s27  }
   0x9   : > { %4089 = sst [smem:[#allocation8_spill]] %s3541_s0  ;;  %s399_s30 = sadd.s32 1, %s3416_s26 }
   0xa   : > { %s396_s18 = ssub.s32 %s3420_s27, %s3541_s0  ;;  %p409_p0 = scmp.ne.s32.totalorder %s3416_s26, %s3412_s25 }
   0xb   : > { %p397_p1 = scmp.eq.s32.totalorder %s396_s18, 0  ;;  %p410_p2 = scmp.eq.s32.totalorder %s3537_s28, 1 }
   0xc   : > { %p415_p3 = scmp.ne.s32.totalorder %s3412_s25, %s3408_s24  ;;  %p416_p4 = scmp.eq.s32.totalorder %s2790_s29, 1 }
   0xd   : > { %s3552_s19 = scalar_select %p397_p1, %s3416_s26, %s399_s30  }
   0xe   : > { %p3554_p5 = por %p410_p2, %p409_p0  ;;  %p3558_p6 = por %p416_p4, %p415_p3 }
   0xf   : > { %4090 = sst [smem:[#allocation9_spill]] %s3552_s19  ;;  %p2793_p7 = scmp.ge.s32.totalorder %s3420_s27, 1 }
  0x10   : > { %s4092_s20 = scalar_select %p3558_p6, 1, 0 }
  0x11   : > { %p489_p8 = scmp.lt.s32.totalorder %s3420_s27, 3 }
  0x12   : > { %4093 = sst [smem:[#allocation10_spill]] %s4092_s20 }
  0x13   : > { %p490_p9 = pnand %p2793_p7, %p489_p8 }
  0x14   : > { %p540_p10 = scmp.lt.s32.totalorder (!%p490_p9), %s3537_s28, 1  ;;  %vm545_vm0 = vcmask (!%p490_p9), 261120   ;;  %s4094_s30 = sld [smem:[#allocation11_spill]] (!%p490_p9)  ;;  %v576_v7 = vld [vmem:[%s4063_s3] sm:$0xff] (!%p490_p9)  ;;  %v577_v8 = vld [vmem:[%s4063_s3 + $0x8] sm:$0xff] (!%p490_p9)  ;;  %v3422_v12 = vmov (!%p490_p9), 0.0|0.0  }
  0x15   : > { %493 = sbr.rel (%p490_p9) target bundleno = 2329 (0x919), region = 88  ;;  %v588_v9 = vld [vmem:[%s4063_s3 + $0x60] sm:$0xff] (!%p490_p9)  ;;  %v3193_v10 = vpack.c.bf16 (!%p490_p9), %v577_v8, %v576_v7  ;;  %v589_v11 = vld [vmem:[%s4063_s3 + $0x68] sm:$0xff] (!%p490_p9)  ;;  %3192 = vmatprep.subr.bf16.mxu0 (!%p490_p9), %v3422_v12  ;;  %3210 = vmatprep.subr.bf16.mxu1 (!%p490_p9), %v3422_v12  ;;  %v578_v14 = vld [vmem:[%s4063_s3 + $0x10] sm:$0xff] (!%p490_p9)  ;;  %vm3423_vm1 = vmmov (!%p490_p9), 0   ;;  %v3424_v20 = vmov (!%p490_p9), 0.0  }
  0x16   : > { %v3211_v13 = vpack.c.bf16 (!%p490_p9), %v589_v11, %v588_v9  ;;  %v579_v15 = vld [vmem:[%s4063_s3 + $0x18] sm:$0xff] (!%p490_p9)  ;;  %v590_v16 = vld [vmem:[%s4063_s3 + $0x70] sm:$0xff] (!%p490_p9)  ;;  %2962 = vmatprep.mubr.msk.f32.mxu0 (!%p490_p9), %vm3423_vm1, %v3424_v20  ;;  %2995 = vmatprep.mubr.msk.f32.mxu1 (!%p490_p9), %vm3423_vm1, %v3424_v20  ;;  %s4095_s23 = sld [smem:[#allocation12_spill]] (!%p490_p9)  ;;  %v580_v26 = vld [vmem:[%s4063_s3 + $0x20] sm:$0xff] (!%p490_p9)  ;;  %vm1551_vm2 = vcmask (!%p490_p9), 64512   ;;  %s537_s29 = sand.u32 (!%p490_p9), 1, %s3412_s25  }
  0x17   : > { %3194 = vmatpush3.bf16.msra.mxu0 (!%p490_p9), %v3193_v10  ;;  %v3196_v17 = vpack.c.bf16 (!%p490_p9), %v579_v15, %v578_v14  ;;  %v591_v18 = vld [vmem:[%s4063_s3 + $0x78] sm:$0xff] (!%p490_p9)  ;;  %v581_v28 = vld [vmem:[%s4063_s3 + $0x28] sm:$0xff] (!%p490_p9)  ;;  %v907_v29 = vld [vmem:[%s4065_s5 + $0x20] sm:$0xff] (!%p490_p9)  ;;  %s2718_s20 = scalar_lea.sflag (!%p490_p9), [#allocation3], %s537_s29  ;;  %s3425_s27 = smov (!%p490_p9), [#allocation2]  }
  0x18   : > { %3212 = vmatpush3.bf16.msra.mxu1 (!%p490_p9), %v3211_v13  ;;  %3195 = vmatprep.subr.bf16.mxu0 (!%p490_p9), %v3422_v12  ;;  %v3214_v19 = vpack.c.bf16 (!%p490_p9), %v591_v18, %v590_v16  ;;  %v908_v30 = vld [vmem:[%s4065_s5 + $0x28] sm:$0xff] (!%p490_p9)  ;;  %v2797_v31 = vld [vmem:[%s4062_s2] ss:$0 sm:$0xff] (!%p490_p9)  ;;  %v3199_v33 = vpack.c.bf16 (!%p490_p9), %v581_v28, %v580_v26  ;;  %v582_v35 = vld [vmem:[%s4063_s3 + $0x30] sm:$0xff] (!%p490_p9) }
  0x19   : > { %3213 = vmatprep.subr.bf16.mxu1 (!%p490_p9), %v3422_v12  ;;  %v3223_v34 = vpack.c.bf16 (!%p490_p9), %v908_v30, %v907_v29  ;;  %v583_v37 = vld [vmem:[%s4063_s3 + $0x38] sm:$0xff] (!%p490_p9)  ;;  %v909_v38 = vld [vmem:[%s4065_s5 + $0x30] sm:$0xff] (!%p490_p9)  ;;  %v584_v42 = vld [vmem:[%s4063_s3 + $0x40] sm:$0xff] (!%p490_p9) }
  0x1a   : > { %v910_v39 = vld [vmem:[%s4065_s5 + $0x38] sm:$0xff] (!%p490_p9)  ;;  %v3202_v40 = vpack.c.bf16 (!%p490_p9), %v583_v37, %v582_v35  ;;  %v585_v43 = vld [vmem:[%s4063_s3 + $0x48] sm:$0xff] (!%p490_p9)  ;;  %v915_v44 = vld [vmem:[%s4065_s5 + $0x60] sm:$0xff] (!%p490_p9) }
  0x1b   : > { %3197 = vmatpush3.bf16.msra.mxu0 (!%p490_p9), %v3196_v17  ;;  %v3226_v41 = vpack.c.bf16 (!%p490_p9), %v910_v39, %v909_v38  ;;  %v916_v45 = vld [vmem:[%s4065_s5 + $0x68] sm:$0xff] (!%p490_p9)  ;;  %v3205_v46 = vpack.c.bf16 (!%p490_p9), %v585_v43, %v584_v42  ;;  %v586_v48 = vld [vmem:[%s4063_s3 + $0x50] sm:$0xff] (!%p490_p9)  ;;  %v587_v49 = vld [vmem:[%s4063_s3 + $0x58] sm:$0xff] (!%p490_p9) }
  0x1c   : > { %s541_s21 = scalar_select %p540_p10, %s3537_s28, 1  ;;  %3215 = vmatpush3.bf16.msra.mxu1 %v3214_v19  ;;  %3198 = vmatprep.subr.bf16.mxu0 %v3422_v12  ;;  %v2796_v25 = vld [vmem:[%s4095_s23] ss:$0 sm:$0xff]  ;;  %v3235_v47 = vpack.c.bf16 %v916_v45, %v915_v44  ;;  %v917_v50 = vld [vmem:[%s4065_s5 + $0x70] sm:$0xff]  ;;  %v918_v51 = vld [vmem:[%s4065_s5 + $0x78] sm:$0xff]  ;;  %v3208_v52 = vpack.c.bf16 %v587_v49, %v586_v48 }
  0x1d   : > { %3222 = vmatprep.subr.bf16.mxu1 %v3422_v12  ;;  %v3238_v53 = vpack.c.bf16 %v918_v51, %v917_v50  ;;  %v903_v54 = vld [vmem:[%s4065_s5] sm:$0xff]  ;;  %v904_v55 = vld [vmem:[%s4065_s5 + $0x8] sm:$0xff]  ;;  %v905_v60 = vld [vmem:[%s4065_s5 + $0x10] sm:$0xff] }
  0x1e   : > { %s2795_s22 = sshll.u32 %s541_s21, 3  ;;  %v1231_v56 = vld [vmem:[%s4067_s7 + $0x20] sm:$0xff]  ;;  %v1232_v57 = vld [vmem:[%s4067_s7 + $0x28] sm:$0xff]  ;;  %v3217_v58 = vpack.c.bf16 %v904_v55, %v903_v54  ;;  %v906_v61 = vld [vmem:[%s4065_s5 + $0x18] sm:$0xff]  ;;  %s2845_s21 = sshll.u32 %s3537_s28, 7 }
  0x1f   : > { %s543_s18 = scalar_lea.vmem %s4094_s30, %s2795_s22  ;;  %v3247_v59 = vpack.c.bf16 %v1232_v57, %v1231_v56  ;;  %v1233_v62 = vld [vmem:[%s4067_s7 + $0x30] sm:$0xff]  ;;  %v1234_v63 = vld [vmem:[%s4067_s7 + $0x38] sm:$0xff]  ;;  %v1227_v16 = vld [vmem:[%s4067_s7] sm:$0xff]  ;;  %s2794_s30 = sshll.u32 %s537_s29, 3 }
  0x20   : > { %v3569_v0 = vld [vmem:[%s543_s18] sm:$0xff]  ;;  %v913_v9 = vld [vmem:[%s4065_s5 + $0x50] sm:$0xff]  ;;  %v914_v10 = vld [vmem:[%s4065_s5 + $0x58] sm:$0xff]  ;;  %s539_s23 = scalar_lea.vmem [#allocation2], %s2794_s30  ;;  %s4017_s24 = scalar_lea.hbm %s4077_s17, %s2845_s21 }
  0x21   : > { %v546_v1 = vsel %vm545_vm0, %v3569_v0, 0.0  ;;  %v1241_v11 = vld [vmem:[%s4067_s7 + $0x70] sm:$0xff]  ;;  %v1242_v13 = vld [vmem:[%s4067_s7 + $0x78] sm:$0xff]  ;;  %v3232_v14 = vpack.c.bf16 %v914_v10, %v913_v9  ;;  %v1228_v17 = vld [vmem:[%s4067_s7 + $0x8] sm:$0xff]  ;;  %s2731_s22 = sshll.u32 %s539_s23, 4  ;;  %s3362_s30 = sshll.u32 %s3425_s27, 4  ;;  %s4019_s22 = int_to_ptr.vmem [resolvable:$true] %s2731_s22  ;;  %s3363_s30 = int_to_ptr.vmem [resolvable:$false] %s3362_s30 }
  0x22   : > { %547 = vadd.xlane.f32.xlu0 %v546_v1  ;;  %v3220_v1 = vpack.c.bf16 %v906_v61, %v905_v60  ;;  %v3262_v15 = vpack.c.bf16 %v1242_v13, %v1241_v11  ;;  %v3241_v18 = vpack.c.bf16 %v1228_v17, %v1227_v16  ;;  %v1229_v19 = vld [vmem:[%s4067_s7 + $0x10] sm:$0xff]  ;;  %v2809_v38 = vld [vmem:[%s4066_s6 + $0x3] ss:$0 sm:$0xff]  ;;  %v2806_v45 = vld [vmem:[%s4066_s6] ss:$0 sm:$0xff]  ;;  %s3358_s28 = scalar_lea.vmem %s4019_s22, 128  ;;  %p3365_p0 = scmp.lt.s32.totalorder %s4019_s22, %s3363_s30 }
  0x23   : > { %v1237_v26 = vld [vmem:[%s4067_s7 + $0x50] sm:$0xff]  ;;  %v2798_v49 = vld [vmem:[%s4064_s4] ss:$0 sm:$0xff]  ;;  %v2807_v54 = vld [vmem:[%s4066_s6 + $0x1] ss:$0 sm:$0xff]  ;;  %p3359_p11 = scmp.ne.s32.totalorder %s4019_s22, %s3358_s28  ;;  %s3364_s18 = scalar_lea.vmem %s3363_s30, 256 }
  0x24   : > { %v2799_v56 = vld [vmem:[%s4064_s4 + $0x1] ss:$0 sm:$0xff]  ;;  %p3366_p1 = scmp.lt.s32.totalorder %s3364_s18, %s3358_s28 }
  0x25   : > { %p3360_p12 = pnand %p3359_p11, %p3554_p5 }
  0x26   : > { %p3367_p2 = por %p3366_p1, %p3365_p0 }
  0x27   : > { %p3361_p13 = pneg %p3360_p12 }
  0x29   : > { %p3368_p3 = pnand %p3367_p2, %p3361_p13 }
  0xaf   : > { %v548_v2 = vpop.xlane.xlu0 %547 }
  0xb0   : > { %v550_v3 = vmul.f32 0.03125, %v548_v2  ;;  %v3250_v2 = vpack.c.bf16 %v1234_v63, %v1233_v62  ;;  %v2800_v62 = vld [vmem:[%s4064_s4 + $0x2] ss:$0 sm:$0xff] }
  0xb2   : > { %v551_v4 = vsub.f32 %v3569_v0, %v550_v3  ;;  %v911_v3 = vld [vmem:[%s4065_s5 + $0x40] sm:$0xff] }
  0xb4   : > { %v552_v5 = vmul.f32 %v551_v4, %v551_v4 }
  0xb6   : > { %v553_v6 = vsel %vm545_vm0, %v552_v5, 0.0  ;;  %v1239_v5 = vld [vmem:[%s4067_s7 + $0x60] sm:$0xff] }
  0xb7   : > { %554 = vadd.xlane.f32.xlu0 %v553_v6  ;;  %v1240_v6 = vld [vmem:[%s4067_s7 + $0x68] sm:$0xff] }
  0xb8   : > { %v3259_v8 = vpack.c.bf16 %v1240_v6, %v1239_v5 }
 0x144   : > { %v555_v21 = vpop.xlane.xlu0 %554 }
 0x145   : > { %v556_v22 = vmul.f32 0.03125, %v555_v21  ;;  %v1230_v21 = vld [vmem:[%s4067_s7 + $0x18] sm:$0xff] }
 0x147   : > { %v557_v23 = vadd.f32 1e-05, %v556_v22  ;;  %v3244_v22 = vpack.c.bf16 %v1230_v21, %v1229_v19 }
 0x149   : > { %3336 = vrsqrt.f32 %v557_v23  ;;  %v1235_v23 = vld [vmem:[%s4067_s7 + $0x40] sm:$0xff] }
 0x153   : > { %v3337_v24 = vpop.eup %3336 }
 0x154   : > { %v559_v27 = vmul.f32 %v3337_v24, %v551_v4  ;;  %v912_v4 = vld [vmem:[%s4065_s5 + $0x48] sm:$0xff] }
 0x155   : > { %v3229_v7 = vpack.c.bf16 %v912_v4, %v911_v3  ;;  %v1236_v24 = vld [vmem:[%s4067_s7 + $0x48] sm:$0xff]  ;;  %v2814_v4 = vld [vmem:[%s4068_s8] ss:$0 sm:$0xff] }
 0x156   : > { %v567_v32 = vmul.f32 %v2796_v25, %v559_v27  ;;  %v3253_v25 = vpack.c.bf16 %v1236_v24, %v1235_v23  ;;  %v1238_v27 = vld [vmem:[%s4067_s7 + $0x58] sm:$0xff] }
 0x157   : > { %v3256_v28 = vpack.c.bf16 %v1238_v27, %v1237_v26 }
 0x158   : > { %v3630_v36 = vadd.f32 %v2797_v31, %v567_v32 }
 0x15a   : > { %2963 = vmatmul.mubr.msk.f32.vlgmr.msra.gmra.mrb[0].mxu0 %vm545_vm0, %v3630_v36  ;;  %2996 = vmatmul.mubr.msk.f32.vlgmr.msra.gmra.mrb[0].mxu1 %vm545_vm0, %v3630_v36 }
 0x15b   : > { %3200 = vmatpush3.bf16.msra.mxu0 %v3199_v33  ;;  %3224 = vmatpush3.bf16.msra.mxu1 %v3223_v34 }
 0x15c   : > { %3201 = vmatprep.subr.bf16.mxu0 %v3422_v12  ;;  %3225 = vmatprep.subr.bf16.mxu1 %v3422_v12 }
 0x15d   : > { %2973 = vmatprep.mubr.msk.f32.mxu0 %vm3423_vm1, %v3424_v20  ;;  %3017 = vmatprep.mubr.msk.f32.mxu1 %vm3423_vm1, %v3424_v20 }
 0x15f   : > { %3203 = vmatpush3.bf16.msra.mxu0 %v3202_v40  ;;  %3227 = vmatpush3.bf16.msra.mxu1 %v3226_v41 }
 0x160   : > { %3204 = vmatprep.subr.bf16.mxu0 %v3422_v12  ;;  %3234 = vmatprep.subr.bf16.mxu1 %v3422_v12 }
 0x162   : > { %2974 = vmatmul.mubr.msk.f32.vlgmr.msra.gmra.mrb[2].mxu0 %vm545_vm0, %v3630_v36  ;;  %3018 = vmatmul.mubr.msk.f32.vlgmr.msra.gmra.mrb[2].mxu1 %vm545_vm0, %v3630_v36 }
 0x163   : > { %3206 = vmatpush3.bf16.msra.mxu0 %v3205_v46  ;;  %3236 = vmatpush3.bf16.msra.mxu1 %v3235_v47  ;;  %v2815_v46 = vld [vmem:[%s4068_s8 + $0x1] ss:$0 sm:$0xff] }
 0x164   : > { %3207 = vmatprep.subr.bf16.mxu0 %v3422_v12  ;;  %3237 = vmatprep.subr.bf16.mxu1 %v3422_v12 }
 0x165   : > { %2984 = vmatprep.mubr.msk.f32.mxu0 %vm3423_vm1, %v3424_v20  ;;  %3039 = vmatprep.mubr.msk.f32.mxu1 %vm3423_vm1, %v3424_v20 }
 0x167   : > { %3209 = vmatpush3.bf16.msra.mxu0 %v3208_v52  ;;  %3239 = vmatpush3.bf16.msra.mxu1 %v3238_v53 }
 0x168   : > { %3216 = vmatprep.subr.bf16.mxu0 %v3422_v12  ;;  %3246 = vmatprep.subr.bf16.mxu1 %v3422_v12 }
 0x16a   : > { %2985 = vmatmul.mubr.msk.f32.vlgmr.msra.gmra.mrb[4].mxu0 %vm545_vm0, %v3630_v36  ;;  %3040 = vmatmul.mubr.msk.f32.vlgmr.msra.gmra.mrb[4].mxu1 %vm545_vm0, %v3630_v36 }
 0x16b   : > { %3218 = vmatpush3.bf16.msra.mxu0 %v3217_v58  ;;  %3248 = vmatpush3.bf16.msra.mxu1 %v3247_v59  ;;  %v2808_v58 = vld [vmem:[%s4066_s6 + $0x2] ss:$0 sm:$0xff] }
 0x16c   : > { %3219 = vmatprep.subr.bf16.mxu0 %v3422_v12  ;;  %3249 = vmatprep.subr.bf16.mxu1 %v3422_v12 }
 0x16d   : > { %3006 = vmatprep.mubr.msk.f32.mxu0 %vm3423_vm1, %v3424_v20  ;;  %3061 = vmatprep.mubr.msk.f32.mxu1 %vm3423_vm1, %v3424_v20 }
 0x16f   : > { %3221 = vmatpush3.bf16.msra.mxu0 %v3220_v1  ;;  %3251 = vmatpush3.bf16.msra.mxu1 %v3250_v2 }
 0x170   : > { %3228 = vmatprep.subr.bf16.mxu0 %v3422_v12  ;;  %3258 = vmatprep.subr.bf16.mxu1 %v3422_v12 }
 0x172   : > { %3007 = vmatmul.mubr.msk.f32.vlgmr.msra.gmra.mrb[6].mxu0 %vm545_vm0, %v3630_v36  ;;  %3062 = vmatmul.mubr.msk.f32.vlgmr.msra.gmra.mrb[6].mxu1 %vm545_vm0, %v3630_v36 }
 0x173   : > { %3230 = vmatpush3.bf16.msra.mxu0 %v3229_v7  ;;  %3260 = vmatpush3.bf16.msra.mxu1 %v3259_v8 }
 0x174   : > { %3231 = vmatprep.subr.bf16.mxu0 %v3422_v12  ;;  %3261 = vmatprep.subr.bf16.mxu1 %v3422_v12 }
 0x175   : > { %3028 = vmatprep.mubr.msk.f32.mxu0 %vm3423_vm1, %v3424_v20  ;;  %3083 = vmatprep.mubr.msk.f32.mxu1 %vm3423_vm1, %v3424_v20 }
 0x177   : > { %3233 = vmatpush3.bf16.msra.mxu0 %v3232_v14  ;;  %3263 = vmatpush3.bf16.msra.mxu1 %v3262_v15 }
 0x178   : > { %3240 = vmatprep.subr.bf16.mxu0 %v3422_v12  ;;  %3101 = vmatprep.subr.mxu1 %v3424_v20 }
 0x17a   : > { %3029 = vmatmul.mubr.msk.f32.vlgmr.msra.gmra.mrb[8].mxu0 %vm545_vm0, %v3630_v36  ;;  %3084 = vmatmul.mubr.msk.f32.vlgmr.msra.gmra.mrb[8].mxu1 %vm545_vm0, %v3630_v36 }
 0x17b   : > { %3242 = vmatpush3.bf16.msra.mxu0 %v3241_v18  ;;  %3050 = vmatprep.mubr.msk.f32.mxu0 %vm3423_vm1, %v3424_v20 }
 0x17c   : > { %3243 = vmatprep.subr.bf16.mxu0 %v3422_v12  ;;  %3103 = vmatprep.mubr.msk.f32.mxu1 %vm3423_vm1, %v3424_v20 }
 0x17f   : > { %3245 = vmatpush3.bf16.msra.mxu0 %v3244_v22 }
 0x180   : > { %3252 = vmatprep.subr.bf16.mxu0 %v3422_v12 }
 0x182   : > { %3051 = vmatmul.mubr.msk.f32.vlgmr.msra.gmra.mrb[10].mxu0 %vm545_vm0, %v3630_v36 }
 0x183   : > { %3254 = vmatpush3.bf16.msra.mxu0 %v3253_v25  ;;  %3072 = vmatprep.mubr.msk.f32.mxu0 %vm3423_vm1, %v3424_v20 }
 0x184   : > { %3255 = vmatprep.subr.bf16.mxu0 %v3422_v12 }
 0x187   : > { %3257 = vmatpush3.bf16.msra.mxu0 %v3256_v28 }
 0x188   : > { %3086 = vmatprep.subr.mxu0 %v3424_v20 }
 0x18a   : > { %3073 = vmatmul.mubr.msk.f32.vlgmr.msra.gmra.mrb[12].mxu0 %vm545_vm0, %v3630_v36  ;;  %v2801_v36 = vld [vmem:[%s4064_s4 + $0x3] ss:$0 sm:$0xff] }
 0x18b   : > { %3088 = vmatprep.mubr.msk.f32.mxu0 %vm3423_vm1, %v3424_v20 }
 0x22d   : > { %v689_v29 = vpop.f32.mrb[0].mxu0  ;;  %v899_v30 = vpop.f32.mrb[0].mxu1 }
 0x22e   : > { %v2964_v31 = vpop.f32.mrb[1].mxu0  ;;  %v2997_v32 = vpop.f32.mrb[1].mxu1  ;;  %v900_v44 = vadd.f32 %v2801_v36, %v899_v30  ;;  %v690_v55 = vadd.f32 %v2798_v49, %v689_v29 }
 0x235   : > { %v759_v33 = vpop.f32.mrb[2].mxu0  ;;  %v1083_v34 = vpop.f32.mrb[2].mxu1 }
 0x236   : > { %v2975_v35 = vpop.f32.mrb[3].mxu0  ;;  %v3019_v37 = vpop.f32.mrb[3].mxu1  ;;  %v1084_v57 = vadd.f32 %v2807_v54, %v1083_v34  ;;  %v760_v59 = vadd.f32 %v2799_v56, %v759_v33 }
 0x23d   : > { %v829_v39 = vpop.f32.mrb[4].mxu0  ;;  %v1223_v40 = vpop.f32.mrb[4].mxu1 }
 0x23e   : > { %v1224_v41 = vadd.f32 %v2809_v38, %v1223_v40  ;;  %v2986_v42 = vpop.f32.mrb[5].mxu0  ;;  %v3041_v43 = vpop.f32.mrb[5].mxu1  ;;  %v830_v3 = vadd.f32 %v2800_v62, %v829_v39  ;;  %v2194_v62 = vld [vmem:[%s4069_s9 + $0x10] sm:$0xff] }
 0x240   : > { %3102 = vmatpush3.xpose.msk.msra.mxu1 %vm1551_vm2, %v1224_v41 }
 0x241   : > { %3111 = vmatprep.subr.mxu1 %v3424_v20 }
 0x243   : > { %3104 = vmatmul.mubr.msk.f32.vlgmr.msra.gmra.mrb[10].mxu1 %vm1551_vm2, %v900_v44 }
 0x244   : > { %3113 = vmatprep.mubr.msk.f32.mxu1 %vm3423_vm1, %v3424_v20 }
 0x245   : > { %v1013_v47 = vpop.f32.mrb[6].mxu0  ;;  %v1407_v48 = vpop.f32.mrb[6].mxu1 }
 0x246   : > { %v1014_v50 = vadd.f32 %v2806_v45, %v1013_v47  ;;  %v1408_v51 = vadd.f32 %v2815_v46, %v1407_v48  ;;  %v3008_v52 = vpop.f32.mrb[7].mxu0  ;;  %v3063_v53 = vpop.f32.mrb[7].mxu1  ;;  %v2816_v48 = vld [vmem:[%s4068_s8 + $0x2] ss:$0 sm:$0xff] }
 0x247   : > { %v2817_v52 = vld [vmem:[%s4068_s8 + $0x3] ss:$0 sm:$0xff] }
 0x248   : > { %3087 = vmatpush3.xpose.msk.msra.mxu0 %vm1551_vm2, %v1014_v50  ;;  %3112 = vmatpush3.msra.mxu1 %v1408_v51 }
 0x249   : > { %3091 = vmatprep.subr.mxu0 %v3424_v20  ;;  %3121 = vmatprep.subr.mxu1 %v3424_v20 }
 0x24b   : > { %3089 = vmatmul.mubr.msk.f32.vlgmr.msra.gmra.mrb[14].mxu0 %vm1551_vm2, %v690_v55 }
 0x24c   : > { %3092 = vmatpush3.xpose.msk.msra.mxu0 %vm1551_vm2, %v1084_v57  ;;  %3093 = vmatprep.mubr.msk.f32.mxu0 %vm3423_vm1, %v3424_v20 }
 0x24d   : > { %v1153_v60 = vpop.f32.mrb[8].mxu0  ;;  %v3841_v61 = vpop.f32.mrb[8].mxu1  ;;  %3096 = vmatprep.subr.mxu0 %v3424_v20 }
 0x24e   : > { %v1154_v63 = vadd.f32 %v2808_v58, %v1153_v60  ;;  %v3030_v1 = vpop.f32.mrb[9].mxu0  ;;  %v3085_v2 = vpop.f32.mrb[9].mxu1  ;;  %v1548_v55 = vadd.f32 %v2817_v52, %v3841_v61  ;;  %v2192_v60 = vld [vmem:[%s4069_s9] sm:$0xff]  ;;  %v2193_v61 = vld [vmem:[%s4069_s9 + $0x8] sm:$0xff] }
 0x24f   : > { %3094 = vmatmul.mubr.msk.f32.vlgmr.msra.gmra.mrb[16].mxu0 %vm1551_vm2, %v760_v59  ;;  %v2195_v2 = vld [vmem:[%s4069_s9 + $0x18] sm:$0xff]  ;;  %v2839_v52 = vld [vmem:[%s4071_s11] ss:$0 sm:$0xff] }
 0x250   : > { %3097 = vmatpush3.xpose.msk.msra.mxu0 %vm1551_vm2, %v1154_v63  ;;  %3098 = vmatprep.mubr.msk.f32.mxu0 %vm3423_vm1, %v3424_v20 }
 0x251   : > { %3106 = vmatprep.subr.mxu0 %v3424_v20 }
 0x253   : > { %3099 = vmatmul.mubr.msk.f32.vlgmr.msra.gmra.mrb[18].mxu0 %vm1551_vm2, %v830_v3 }
 0x254   : > { %3108 = vmatprep.mubr.msk.f32.mxu0 %vm3423_vm1, %v3424_v20 }
 0x255   : > { %v1337_v5 = vpop.f32.mrb[10].mxu0 }
 0x256   : > { %v1338_v6 = vadd.f32 %v2814_v4, %v1337_v5  ;;  %v3052_v7 = vpop.f32.mrb[11].mxu0 }
 0x258   : > { %3107 = vmatpush3.msra.mxu0 %v1338_v6 }
 0x259   : > { %3116 = vmatprep.subr.mxu0 %v3424_v20 }
 0x25d   : > { %v1477_v8 = vpop.f32.mrb[12].mxu0 }
 0x25e   : > { %v3074_v9 = vpop.f32.mrb[13].mxu0  ;;  %v1478_v51 = vadd.f32 %v2816_v48, %v1477_v8 }
 0x316   : > { %v1852_v10 = vpop.f32.mrb[10].mxu1 }
 0x317   : > { %v3105_v11 = vpop.f32.mrb[11].mxu1  ;;  %v1865_v22 = vsel %vm1551_vm2, %v1852_v10, -inf }
 0x31e   : > { %v1624_v13 = vpop.f32.mrb[14].mxu0 }
 0x31f   : > { %v3090_v14 = vpop.f32.mrb[15].mxu0  ;;  %v1856_v15 = vsel %vm1551_vm2, %v1624_v13, -inf }
 0x320   : > { %1857 = vmax.xlane.f32.xlu1 %v1856_v15 }
 0x322   : > { %v1700_v16 = vpop.f32.mrb[16].mxu0 }
 0x323   : > { %v3095_v17 = vpop.f32.mrb[17].mxu0  ;;  %v1859_v18 = vsel %vm1551_vm2, %v1700_v16, -inf }
 0x324   : > { %1860 = vmax.xlane.f32.xlu1 %v1859_v18 }
 0x326   : > { %v1776_v19 = vpop.f32.mrb[18].mxu0 }
 0x327   : > { %v3100_v21 = vpop.f32.mrb[19].mxu0  ;;  %v1862_v23 = vsel %vm1551_vm2, %v1776_v19, -inf }
 0x328   : > { %1866 = vmax.xlane.f32.xlu1 %v1865_v22  ;;  %1863 = vmax.xlane.f32.xlu0 %v1862_v23 }
 0x3ad   : > { %v1858_v24 = vpop.xlane.xlu1 %1857 }
 0x3ae   : > { %v1868_v25 = vsub.f32 %v1624_v13, %v1858_v24 }
 0x3b0   : > { %v1872_v26 = vmul.f32 1.442695, %v1868_v25 }
 0x3b1   : > { %v1861_v27 = vpop.xlane.xlu1 %1860 }
 0x3b2   : > { %3338 = vpow2.f32 %v1872_v26  ;;  %v1869_v28 = vsub.f32 %v1700_v16, %v1861_v27 }
 0x3b4   : > { %v1874_v29 = vmul.f32 1.442695, %v1869_v28 }
 0x3b5   : > { %v1867_v30 = vpop.xlane.xlu1 %1866  ;;  %v1864_v31 = vpop.xlane.xlu0 %1863 }
 0x3b6   : > { %3340 = vpow2.f32 %v1874_v29  ;;  %v1871_v32 = vsub.f32 %v1852_v10, %v1867_v30  ;;  %v1870_v33 = vsub.f32 %v1776_v19, %v1864_v31 }
 0x3b8   : > { %v1878_v34 = vmul.f32 1.442695, %v1871_v32  ;;  %v1876_v35 = vmul.f32 1.442695, %v1870_v33 }
 0x3ba   : > { %3342 = vpow2.f32 %v1878_v34  ;;  %v2533_v34 = vld [vmem:[%s4073_s13] sm:$0xff] }
 0x3bb   : > { %3344 = vpow2.f32 %v1876_v35 }
 0x3bc   : > { %v3339_v37 = vpop.eup %3338 }
 0x3bd   : > { %v1880_v38 = vsel %vm1551_vm2, %v3339_v37, 0.0 }
 0x3be   : > { %1881 = vadd.xlane.f32.xlu0 %v1880_v38  ;;  %v2536_v38 = vld [vmem:[%s4073_s13 + $0x18] sm:$0xff] }
 0x3c0   : > { %v3341_v39 = vpop.eup %3340 }
 0x3c1   : > { %v1883_v40 = vsel %vm1551_vm2, %v3341_v39, 0.0 }
 0x3c2   : > { %1884 = vadd.xlane.f32.xlu1 %v1883_v40  ;;  %v2622_v40 = vld [vmem:[%s4075_s15] sm:$0xff] }
 0x3c4   : > { %v3343_v36 = vpop.eup %3342 }
 0x3c5   : > { %v3345_v41 = vpop.eup %3344  ;;  %v1889_v42 = vsel %vm1551_vm2, %v3343_v36, 0.0 }
 0x3c6   : > { %1890 = vadd.xlane.f32.xlu1 %v1889_v42  ;;  %v1886_v43 = vsel %vm1551_vm2, %v3345_v41, 0.0 }
 0x3c7   : > { %1887 = vadd.xlane.f32.xlu0 %v1886_v43  ;;  %v2625_v43 = vld [vmem:[%s4075_s15 + $0x18] sm:$0xff] }
 0x44b   : > { %v1882_v44 = vpop.xlane.xlu0 %1881 }
 0x44c   : > { %3346 = vrcp.f32 %v1882_v44 }
 0x44f   : > { %v1885_v45 = vpop.xlane.xlu1 %1884 }
 0x450   : > { %3348 = vrcp.f32 %v1885_v45  ;;  %v2626_v45 = vld [vmem:[%s4075_s15 + $0x20] sm:$0xff] }
 0x453   : > { %v1891_v46 = vpop.xlane.xlu1 %1890 }
 0x454   : > { %3350 = vrcp.f32 %v1891_v46  ;;  %v1888_v47 = vpop.xlane.xlu0 %1887  ;;  %v2627_v46 = vld [vmem:[%s4075_s15 + $0x28] sm:$0xff] }
 0x455   : > { %3352 = vrcp.f32 %v1888_v47  ;;  %v3277_v47 = vpack.c.bf16 %v2627_v46, %v2626_v45 }
 0x456   : > { %v3347_v49 = vpop.eup %3346 }
 0x457   : > { %v1896_v50 = vmul.f32 %v3347_v49, %v3339_v37  ;;  %v2535_v37 = vld [vmem:[%s4073_s13 + $0x10] sm:$0xff] }
 0x459   : > { %3109 = vmatmul.mubr.msk.f32.vlgmr.msra.gmra.mrb[20].mxu0 %vm1551_vm2, %v1896_v50 }
 0x45a   : > { %v3349_v53 = vpop.eup %3348  ;;  %3117 = vmatpush3.msra.mxu0 %v1478_v51  ;;  %3118 = vmatprep.mubr.msk.f32.mxu0 %vm3423_vm1, %v3424_v20 }
 0x45b   : > { %v1897_v54 = vmul.f32 %v3349_v53, %v3341_v39  ;;  %3126 = vmatprep.subr.mxu0 %v3424_v20  ;;  %v3268_v39 = vpack.c.bf16 %v2536_v38, %v2535_v37 }
 0x45d   : > { %3114 = vmatmul.mubr.msk.f32.vlgmr.msra.gmra.mrb[12].mxu1 %vm1551_vm2, %v1897_v54  ;;  %v2840_v54 = vld [vmem:[%s4072_s12] ss:$0 sm:$0xff] }
 0x45e   : > { %v3351_v56 = vpop.eup %3350  ;;  %3122 = vmatpush3.msra.mxu1 %v1548_v55  ;;  %3123 = vmatprep.mubr.msk.f32.mxu1 %vm3423_vm1, %v3424_v20 }
 0x45f   : > { %v3353_v57 = vpop.eup %3352  ;;  %v1899_v58 = vmul.f32 %v3351_v56, %v3343_v36  ;;  %3131 = vmatprep.subr.mxu1 %v3424_v20  ;;  %v2623_v36 = vld [vmem:[%s4075_s15 + $0x8] sm:$0xff] }
 0x460   : > { %v1898_v59 = vmul.f32 %v3353_v57, %v3345_v41  ;;  %v2624_v41 = vld [vmem:[%s4075_s15 + $0x10] sm:$0xff]  ;;  %v3271_v42 = vpack.c.bf16 %v2623_v36, %v2622_v40 }
 0x461   : > { %3124 = vmatmul.mubr.msk.f32.vlgmr.msra.gmra.mrb[14].mxu1 %vm1551_vm2, %v1899_v58  ;;  %v3274_v44 = vpack.c.bf16 %v2625_v43, %v2624_v41  ;;  %v2628_v57 = vld [vmem:[%s4075_s15 + $0x30] sm:$0xff]  ;;  %v2629_v58 = vld [vmem:[%s4075_s15 + $0x38] sm:$0xff] }
 0x462   : > { %3119 = vmatmul.mubr.msk.f32.vlgmr.msra.gmra.mrb[22].mxu0 %vm1551_vm2, %v1898_v59  ;;  %3133 = vmatprep.mubr.msk.f32.mxu1 %vm3423_vm1, %v3424_v20  ;;  %v3280_v59 = vpack.c.bf16 %v2629_v58, %v2628_v57 }
 0x463   : > { %3128 = vmatprep.mubr.msk.f32.mxu0 %vm3423_vm1, %v3424_v20  ;;  %3127 = vmatpush3.msra.mxu0 %v2192_v60  ;;  %v2630_v60 = vld [vmem:[%s4075_s15 + $0x40] sm:$0xff] }
 0x464   : > { %3136 = vmatprep.subr.mxu0 %v3424_v20  ;;  %3132 = vmatpush3.msra.mxu1 %v2193_v61  ;;  %v2631_v61 = vld [vmem:[%s4075_s15 + $0x48] sm:$0xff] }
 0x465   : > { %3141 = vmatprep.subr.mxu1 %v3424_v20 }
 0x52c   : > { %v1969_v63 = vpop.f32.mrb[20].mxu0 }
 0x52d   : > { %v3110_v1 = vpop.f32.mrb[21].mxu0  ;;  %3129 = vmatmul.mubr.msk.f32.vlgmr.msra.gmra.mrb[24].mxu0 %vm1551_vm2, %v1969_v63  ;;  %v2632_v63 = vld [vmem:[%s4075_s15 + $0x50] sm:$0xff] }
 0x52e   : > { %3137 = vmatpush3.msra.mxu0 %v2194_v62  ;;  %3138 = vmatprep.mubr.msk.f32.mxu0 %vm3423_vm1, %v3424_v20  ;;  %v3283_v62 = vpack.c.bf16 %v2631_v61, %v2630_v60  ;;  %v2633_v1 = vld [vmem:[%s4075_s15 + $0x58] sm:$0xff] }
 0x52f   : > { %3264 = vmatprep.subr.bf16.mxu0 %v3422_v12 }
 0x530   : > { %v2042_v3 = vpop.f32.mrb[12].mxu1 }
 0x531   : > { %v3115_v4 = vpop.f32.mrb[13].mxu1  ;;  %3134 = vmatmul.mubr.msk.f32.vlgmr.msra.gmra.mrb[16].mxu1 %vm1551_vm2, %v2042_v3  ;;  %v2634_v3 = vld [vmem:[%s4075_s15 + $0x60] sm:$0xff] }
 0x532   : > { %3142 = vmatpush3.msra.mxu1 %v2195_v2  ;;  %3143 = vmatprep.mubr.msk.f32.mxu1 %vm3423_vm1, %v3424_v20  ;;  %v3286_v2 = vpack.c.bf16 %v2633_v1, %v2632_v63  ;;  %v2635_v4 = vld [vmem:[%s4075_s15 + $0x68] sm:$0xff] }
 0x533   : > { %3270 = vmatprep.subr.bf16.mxu1 %v3422_v12 }
 0x534   : > { %v2188_v5 = vpop.f32.mrb[14].mxu1 }
 0x535   : > { %v2115_v6 = vpop.f32.mrb[22].mxu0  ;;  %v3125_v7 = vpop.f32.mrb[15].mxu1  ;;  %3144 = vmatmul.mubr.msk.f32.vlgmr.msra.gmra.mrb[18].mxu1 %vm1551_vm2, %v2188_v5  ;;  %v3289_v5 = vpack.c.bf16 %v2635_v4, %v2634_v3 }
 0x536   : > { %v3120_v8 = vpop.f32.mrb[23].mxu0  ;;  %3139 = vmatmul.mubr.msk.f32.vlgmr.msra.gmra.mrb[26].mxu0 %vm1551_vm2, %v2115_v6  ;;  %3189 = vmatprep.mubr.msk.f32.mxu1 %vm3423_vm1, %v3424_v20  ;;  %v2636_v6 = vld [vmem:[%s4075_s15 + $0x70] sm:$0xff]  ;;  %v2637_v7 = vld [vmem:[%s4075_s15 + $0x78] sm:$0xff] }
 0x537   : > { %3154 = vmatprep.mubr.msk.f32.mxu0 %vm3423_vm1, %v3424_v20  ;;  %v2838_v20 = vld [vmem:[%s4070_s10] ss:$0 sm:$0xff]  ;;  %3272 = vmatpush3.bf16.msra.mxu1 %v3271_v42  ;;  %v3292_v8 = vpack.c.bf16 %v2637_v7, %v2636_v6 }
 0x538   : > { %3273 = vmatprep.subr.bf16.mxu1 %v3422_v12 }
 0x53b   : > { %3275 = vmatpush3.bf16.msra.mxu1 %v3274_v44 }
 0x53c   : > { %3276 = vmatprep.subr.bf16.mxu1 %v3422_v12 }
 0x53f   : > { %3278 = vmatpush3.bf16.msra.mxu1 %v3277_v47 }
 0x540   : > { %3279 = vmatprep.subr.bf16.mxu1 %v3422_v12 }
 0x543   : > { %3281 = vmatpush3.bf16.msra.mxu1 %v3280_v59 }
 0x544   : > { %3282 = vmatprep.subr.bf16.mxu1 %v3422_v12 }
 0x547   : > { %3284 = vmatpush3.bf16.msra.mxu1 %v3283_v62 }
 0x548   : > { %3285 = vmatprep.subr.bf16.mxu1 %v3422_v12 }
 0x54b   : > { %3287 = vmatpush3.bf16.msra.mxu1 %v3286_v2 }
 0x54c   : > { %3288 = vmatprep.subr.bf16.mxu1 %v3422_v12 }
 0x54f   : > { %3290 = vmatpush3.bf16.msra.mxu1 %v3289_v5 }
 0x550   : > { %3291 = vmatprep.subr.bf16.mxu1 %v3422_v12 }
 0x553   : > { %3293 = vmatpush3.bf16.msra.mxu1 %v3292_v8 }
 0x600   : > { %v2265_v9 = vpop.f32.mrb[24].mxu0 }
 0x601   : > { %v3130_v10 = vpop.f32.mrb[25].mxu0  ;;  %v2488_v13 = vsel %vm545_vm0, %v2265_v9, 0.0  ;;  %v2841_v9 = vld [vmem:[%s4074_s14] ss:$0 sm:$0xff] }
 0x604   : > { %v2338_v11 = vpop.f32.mrb[16].mxu1 }
 0x605   : > { %v2489_v14 = vsel %vm545_vm0, %v2338_v11, 0.0  ;;  %v3135_v15 = vpop.f32.mrb[17].mxu1 }
 0x606   : > { %v2490_v16 = vadd.f32 %v2489_v14, %v2488_v13 }
 0x608   : > { %v2484_v17 = vpop.f32.mrb[18].mxu1 }
 0x609   : > { %v2411_v18 = vpop.f32.mrb[26].mxu0  ;;  %v3145_v19 = vpop.f32.mrb[19].mxu1  ;;  %v2493_v24 = vsel %vm545_vm0, %v2484_v17, 0.0 }
 0x60a   : > { %v2491_v21 = vsel %vm545_vm0, %v2411_v18, 0.0  ;;  %v3140_v22 = vpop.f32.mrb[27].mxu0  ;;  %v2843_v18 = vld [vmem:[%s4076_s16] ss:$0 sm:$0xff] }
 0x60b   : > { %v2492_v23 = vadd.f32 %v2491_v21, %v2490_v16 }
 0x60d   : > { %v2494_v25 = vadd.f32 %v2493_v24, %v2492_v23 }
 0x60f   : > { %v2502_v26 = vadd.f32 %v2838_v20, %v2494_v25 }
 0x611   : > { %v3924_v27 = vadd.f32 %v2502_v26, %v3569_v0  ;;  %v2534_v0 = vld [vmem:[%s4073_s13 + $0x8] sm:$0xff] }
 0x612   : > { %v3265_v35 = vpack.c.bf16 %v2534_v0, %v2533_v34 }
 0x613   : > { %v2504_v28 = vsel %vm545_vm0, %v3924_v27, 0.0 }
 0x614   : > { %2505 = vadd.xlane.f32.xlu0 %v2504_v28  ;;  %3266 = vmatpush3.bf16.msra.mxu0 %v3265_v35 }
 0x615   : > { %3267 = vmatprep.subr.bf16.mxu0 %v3422_v12 }
 0x618   : > { %3269 = vmatpush3.bf16.msra.mxu0 %v3268_v39 }
 0x6a1   : > { %v2506_v29 = vpop.xlane.xlu0 %2505 }
 0x6a2   : > { %v2507_v30 = vmul.f32 0.03125, %v2506_v29 }
 0x6a4   : > { %v2508_v31 = vsub.f32 %v3924_v27, %v2507_v30 }
 0x6a6   : > { %v2509_v32 = vmul.f32 %v2508_v31, %v2508_v31 }
 0x6a8   : > { %v2510_v33 = vsel %vm545_vm0, %v2509_v32, 0.0 }
 0x6a9   : > { %2511 = vadd.xlane.f32.xlu1 %v2510_v33 }
 0x736   : > { %v2512_v48 = vpop.xlane.xlu1 %2511 }
 0x737   : > { %v2513_v49 = vmul.f32 0.03125, %v2512_v48 }
 0x739   : > { %v2514_v50 = vadd.f32 1e-05, %v2513_v49 }
 0x73b   : > { %3354 = vrsqrt.f32 %v2514_v50 }
 0x745   : > { %v3355_v51 = vpop.eup %3354 }
 0x746   : > { %v2516_v53 = vmul.f32 %v3355_v51, %v2508_v31 }
 0x748   : > { %v2524_v55 = vmul.f32 %v2839_v52, %v2516_v53 }
 0x74a   : > { %v2532_v56 = vadd.f32 %v2840_v54, %v2524_v55 }
 0x74c   : > { %3155 = vmatmul.mubr.msk.f32.vlgmr.msra.gmra.mrb[28].mxu0 %vm545_vm0, %v2532_v56 }
 0x81f   : > { %v2613_v10 = vpop.f32.mrb[28].mxu0 }
 0x820   : > { %v2614_v11 = vadd.f32 %v2841_v9, %v2613_v10  ;;  %v3156_v13 = vpop.f32.mrb[29].mxu0 }
 0x822   : > { %v2618_v12 = vmul.f32 0.70710677, %v2614_v11  ;;  %v2617_v15 = vmul.f32 0.5, %v2614_v11 }
 0x824   : > { %3356 = verf.f32 %v2618_v12 }
 0x82e   : > { %v3357_v14 = vpop.eup %3356 }
 0x82f   : > { %v2620_v16 = vadd.f32 1.0, %v3357_v14 }
 0x831   : > { %v2621_v17 = vmul.f32 %v2620_v16, %v2617_v15 }
 0x833   : > { %3190 = vmatmul.mubr.f32.vlgmr.msra.gmra.mrb[20].mxu1 %v2621_v17 }
 0x906   : > { %v2711_v19 = vpop.f32.mrb[20].mxu1 }
 0x907   : > { %v2712_v21 = vadd.f32 %v2843_v18, %v2711_v19  ;;  %v3191_v22 = vpop.f32.mrb[21].mxu1 }
 0x909   : > { %v2715_v23 = vadd.f32 %v2712_v21, %v3924_v27 }
 0x90b   : > { %2716 = vst.msk [vmem:[%s539_s23] sm:$0xff] %vm545_vm0, %v2715_v23 }
 0x90c   : > { %3371 = shalt.err (!%p3368_p3)
}
 0x90d   : > { %s3372_s29 = scalar_lea.hbm %s4017_s24, 128  ;;  %s3376_s23 = scalar_lea.hbm %s4077_s17, 256 }
 0x90e   : > { %p3373_p4 = scmp.ne.s32.totalorder %s4017_s24, %s3372_s29  ;;  %p3377_p9 = scmp.lt.u32.totalorder %s4017_s24, %s4077_s17 }
 0x90f   : > { %p3378_p10 = scmp.lt.u32.totalorder %s3376_s23, %s3372_s29  ;;  %p3380_p12 = scmp.lt.u32.totalorder %s3372_s29, %s4017_s24 }
 0x910   : > { %p3374_p7 = pnand %p3373_p4, %p3554_p5 }
 0x911   : > { %p3379_p11 = por %p3378_p10, %p3377_p9 }
 0x912   : > { %p3375_p8 = pneg %p3374_p7 }
 0x913   : > { %p3381_p13 = por %p3380_p12, %p3379_p11 }
 0x915   : > { %p3382_p0 = pnand %p3381_p13, %p3375_p8 }
 0x917   : > { %3385 = shalt.err (!%p3382_p0)
}
 0x918   : > { %3294 = dma.vmem_to_hbm [thread:$0]  (%p3554_p5), %s4019_s22, 128, %s4017_s24, %s2718_s20  }
 0x919 PF: > { %s4096_s28 = sld [smem:[#allocation7_spill]]  ;;  %s4097_s27 = sld [smem:[#allocation5_spill]] }
 0x91f   : > { %p3300_p1 = scmp.ge.s32.totalorder %s4096_s28, 2  ;;  %s2743_s18 = sand.u32 1, %s4097_s27  }
 0x920   : > { %s2744_s19 = scalar_lea.sflag [#allocation3], %s2743_s18 }
 0x921   : > { %p3297_p2 = pnand %p3300_p1, %p3558_p6 }
 0x923   : > { %3403 = dma.done.wait (!%p3297_p2), %s2744_s19, 128  }
 0x924   : > { %3405 = vsyncadd (!%p3297_p2), %s2744_s19, 4294967168  ;;  %s4099_s27 = sld [smem:[#allocation8_spill]]  ;;  %s4100_s29 = sld [smem:[#allocation6_spill]] }
 0x925   : > { %s4101_s26 = sld [smem:[#allocation9_spill]]  ;;  %s4102_s24 = smov %s3412_s25 }
 0x92a   : > { %p27_p3 = scmp.ge.s32.totalorder %s4099_s27, 4   ;;  %s4103_s25 = smov %s4100_s29 }
 0x92c   :  { %29 = sbr.rel (!%p27_p3) target bundleno = 6 (0x6), region = 123 }
 0x933   :  { %2749 = vsyncpa [#allocation3], 1 }
 0x934   :  { %2751 = vsyncpa [#allocation3 + $0x1], 1 }

</bundles_post_ra>
